<compile_context>
chip_gen: v7x
topology: tpu7x:2x2x1
jax: 0.10.0
libtpu: 0.0.40
codegen_flags: <defaults>
</compile_context>

<pallas_src>
import functools

import jax
import jax.numpy as jnp
from jax import lax
from jax.experimental import pallas as pl
from jax.experimental.pallas import tpu as pltpu


def _round_up(n, m):
    return ((n + m - 1) // m) * m


def _pad_to(a, shape):
    return jnp.pad(a, [(0, s - d) for d, s in zip(a.shape, shape)])


def _rnn_kernel(x_ref, wih_ref, whh_ref, b_ref, wfc_ref, bfc_ref, out_ref,
                h_ref, xproj_ref, *, seq_len, chunk, n_chunks, unroll):
    """Grid step k: project chunk k (if any), run recurrence on chunk k-1,
    and on the final step apply the fc layer to the carried hidden state."""
    k = pl.program_id(0)
    Tt, Bp, I = x_ref.shape
    Hp = whh_ref.shape[0]

    # ---- init carried hidden state (h0 = 0, as in the PyTorch module) ----
    @pl.when(k == 0)
    def _init():
        h_ref[...] = jnp.zeros_like(h_ref)

    # ---- Phase 1: input projection for chunk k (independent of h) ----
    # One big MXU matmul per chunk; result parked in a double-buffered VMEM
    # scratch so the serial loop only does cheap first-axis ref loads.
    @pl.when(k < n_chunks)
    def _project():
        slot = lax.rem(k, 2)
        x_all = x_ref[...].reshape(Tt * Bp, I).astype(wih_ref.dtype)
        proj = (
            jnp.dot(x_all, wih_ref[...], preferred_element_type=jnp.float32)
            + b_ref[...]
        )
        xproj_ref[pl.ds(slot * Tt, Tt)] = proj.reshape(Tt, Bp, Hp)

    # ---- Phase 2: serial recurrence over chunk k-1 (skewed pipeline) ----
    @pl.when(k > 0)
    def _recur():
        c = k - 1
        base = lax.rem(c, 2) * Tt
        whh = whh_ref[...]

        def step(i, h):
            pre = xproj_ref[base + i] + jnp.dot(
                h.astype(whh.dtype), whh, preferred_element_type=jnp.float32)
            h_new = jnp.tanh(pre)  # EUP tanh, f32
            if seq_len % chunk != 0:
                # mask timesteps past the real sequence end (partial last chunk)
                h_new = jnp.where(c * chunk + i < seq_len, h_new, h)
            return h_new

        h_ref[...] = lax.fori_loop(0, Tt, step, h_ref[...], unroll=unroll)

    # ---- epilogue: fc on the last hidden state (lane-dense Op) ----
    @pl.when(k == n_chunks)
    def _finalize():
        h_last = h_ref[...]
        out_ref[...] = (
            jnp.dot(h_last.astype(wfc_ref.dtype), wfc_ref[...],
                    preferred_element_type=jnp.float32)
            + bfc_ref[...]
        ).astype(out_ref.dtype)


def simple_rnn_forward(x, params, *, time_chunk=128, weight_dtype=None):
    """x: (B, T, I) float32, batch_first like the PyTorch module."""
    w_ih, w_hh = params["w_ih"], params["w_hh"]
    b_ih, b_hh = params["b_ih"], params["b_hh"]
    w_fc, b_fc = params["w_fc"], params["b_fc"]

    B, T, I = x.shape
    H = w_ih.shape[0]
    O = w_fc.shape[0]

    # Padded sizes: sublane (8) on batch, lane (128) on hidden/output dims.
    # Padded hidden *columns* stay exactly 0 (zero weight cols + zero bias),
    # padded batch *rows* are garbage-but-independent and sliced off below.
    Bp = _round_up(max(B, 8), 8)
    Hp = _round_up(H, 128)
    Op = _round_up(O, 128)
    Tt = T if T <= time_chunk else time_chunk
    n_chunks = pl.cdiv(T, Tt)
    unroll = max(1, min(Tt, 8))

    if weight_dtype is None:
        # bf16 weights (f32 accumulate) once the MXU tiles are big enough to
        # benefit; keep f32 at tiny H for exactness vs the f32 reference.
        weight_dtype = jnp.bfloat16 if H >= 256 else jnp.float32

    # Glue: time-major layout + transposed weights, combined recurrent bias.
    x_tm = _pad_to(jnp.transpose(x, (1, 0, 2)), (T, Bp, I)).astype(jnp.float32)
    wih_t = _pad_to(w_ih.T, (I, Hp)).astype(weight_dtype)          # (I,  Hp)
    whh_t = _pad_to(w_hh.T, (Hp, Hp)).astype(weight_dtype)         # (Hp, Hp)
    b = _pad_to((b_ih + b_hh).reshape(1, H), (1, Hp)).astype(jnp.float32)
    wfc_t = _pad_to(w_fc.T, (Hp, Op)).astype(weight_dtype)         # (Hp, Op)
    bfc = _pad_to(b_fc.reshape(1, O), (1, Op)).astype(jnp.float32)

    # Explicit VMEM budget derived from the tiles (double-buffered inputs).
    w_bytes = jnp.dtype(weight_dtype).itemsize
    resident = (
        2 * Tt * Bp * I * 4                       # x chunk (2 pipeline buffers)
        + 2 * Tt * Bp * Hp * 4                    # xproj scratch (2 slots)
        + Bp * Hp * 4                             # carried h
        + 2 * (I * Hp + Hp * Hp + Hp * Op) * w_bytes
        + 2 * (Hp + Op) * 4
        + 2 * Bp * Op * 4                         # output block
    )
    vmem_limit = int(min(64 * 1024 * 1024, max(2 * resident, 16 * 1024 * 1024)))

    cost = pl.CostEstimate(
        flops=int(2 * T * B * I * H + 2 * T * B * H * H + 2 * B * H * O),
        transcendentals=int(T * B * H),
        bytes_accessed=int(
            x.size * 4
            + (w_ih.size + w_hh.size + w_fc.size) * w_bytes
            + (b_ih.size + b_hh.size + b_fc.size) * 4
            + B * O * 4),
    )

    kernel = functools.partial(
        _rnn_kernel, seq_len=T, chunk=Tt, n_chunks=n_chunks, unroll=unroll)

    last_chunk = n_chunks - 1
    out_p = pl.pallas_call(
        kernel,
        out_shape=jax.ShapeDtypeStruct((Bp, Op), jnp.float32),
        grid=(n_chunks + 1,),  # +1 step: the skewed recurrence drains + fc
        in_specs=[
            # x: time-tiled, auto double-buffered DMA (clamped on drain step).
            pl.BlockSpec((Tt, Bp, I), lambda k: (jnp.minimum(k, last_chunk), 0, 0)),
            # weights/biases: constant block index -> fetched once, resident.
            pl.BlockSpec((I, Hp), lambda k: (0, 0)),
            pl.BlockSpec((Hp, Hp), lambda k: (0, 0)),
            pl.BlockSpec((1, Hp), lambda k: (0, 0)),
            pl.BlockSpec((Hp, Op), lambda k: (0, 0)),
            pl.BlockSpec((1, Op), lambda k: (0, 0)),
        ],
        out_specs=pl.BlockSpec((Bp, Op), lambda k: (0, 0)),
        scratch_shapes=[
            pltpu.VMEM((Bp, Hp), jnp.float32),            # carried hidden state
            pltpu.VMEM((2 * Tt, Bp, Hp), jnp.float32),    # xproj double buffer
        ],
        compiler_params=pltpu.CompilerParams(
            dimension_semantics=("arbitrary",),
            vmem_limit_bytes=vmem_limit,
        ),
        cost_estimate=cost,
    )(x_tm, wih_t, whh_t, b, wfc_t, bfc)

    return out_p[:B, :O]


def init_params(key, input_size, hidden_size, output_size):
    """Deterministic parameter init matching the PyTorch module's shapes."""
    k = jax.random.split(key, 6)
    s_rnn = 1.0 / jnp.sqrt(hidden_size)
    s_fc = 1.0 / jnp.sqrt(hidden_size)
    return {
        "w_ih": jax.random.uniform(k[0], (hidden_size, input_size), jnp.float32, -s_rnn, s_rnn),
        "w_hh": jax.random.uniform(k[1], (hidden_size, hidden_size), jnp.float32, -s_rnn, s_rnn),
        "b_ih": jax.random.uniform(k[2], (hidden_size,), jnp.float32, -s_rnn, s_rnn),
        "b_hh": jax.random.uniform(k[3], (hidden_size,), jnp.float32, -s_rnn, s_rnn),
        "w_fc": jax.random.uniform(k[4], (output_size, hidden_size), jnp.float32, -s_fc, s_fc),
        "b_fc": jax.random.uniform(k[5], (output_size,), jnp.float32, -s_fc, s_fc),
    }


def reference_forward(x, params):
    """Pure-JAX reference of the PyTorch forward, for correctness checking."""
    B, T, I = x.shape
    H = params["w_ih"].shape[0]
    h = jnp.zeros((B, H), jnp.float32)
    for t in range(T):
        h = jnp.tanh(
            x[:, t, :] @ params["w_ih"].T + params["b_ih"]
            + h @ params["w_hh"].T + params["b_hh"]
        )
    return h @ params["w_fc"].T + params["b_fc"]


if __name__ == "__main__":
    batch, seq, input_size, hidden_size, output_size = 2, 8, 16, 32, 8

    key = jax.random.PRNGKey(0)
    kx, kp = jax.random.split(key)
    x = jax.random.normal(kx, (batch, seq, input_size), jnp.float32)
    params = init_params(kp, input_size, hidden_size, output_size)

    out = simple_rnn_forward(x, params)
    out = jax.block_until_ready(out)

    ref = reference_forward(x, params)
    assert out.shape == (batch, output_size)
    assert jnp.allclose(out, ref, atol=1e-4, rtol=1e-4), "mismatch vs pure-JAX reference"

    print("KERNEL_OK")
</pallas_src>

<mosaic_0001>
module attributes {stable_mosaic.version = 11 : i64} {
  func.func @_rnn_kernel(%arg0: i32, %arg1: memref<8x8x16xf32, #tpu.memory_space<vmem>>, %arg2: memref<16x128xf32, #tpu.memory_space<vmem>>, %arg3: memref<128x128xf32, #tpu.memory_space<vmem>>, %arg4: memref<1x128xf32, #tpu.memory_space<vmem>>, %arg5: memref<128x128xf32, #tpu.memory_space<vmem>>, %arg6: memref<1x128xf32, #tpu.memory_space<vmem>>, %arg7: memref<8x128xf32, #tpu.memory_space<vmem>>, %arg8: memref<8x128xf32, #tpu.memory_space<vmem>>, %arg9: memref<16x8x128xf32, #tpu.memory_space<vmem>>) attributes {dimension_semantics = [#tpu.dimension_semantics<arbitrary>], iteration_bounds = array<i64: 2>, scalar_prefetch = 0 : i64, scratch_operands = 2 : i64, tpu.core_type = #tpu.core_type<tc>, window_params = [{transform_indices = @transform_0, window_bounds = array<i64: 8, 8, 16>}, {pipeline_mode = #tpu.pipeline_mode<synchronous>, transform_indices = @transform_1, window_bounds = array<i64: 16, 128>}, {pipeline_mode = #tpu.pipeline_mode<synchronous>, transform_indices = @transform_2, window_bounds = array<i64: 128, 128>}, {pipeline_mode = #tpu.pipeline_mode<synchronous>, transform_indices = @transform_3, window_bounds = array<i64: 1, 128>}, {pipeline_mode = #tpu.pipeline_mode<synchronous>, transform_indices = @transform_4, window_bounds = array<i64: 128, 128>}, {pipeline_mode = #tpu.pipeline_mode<synchronous>, transform_indices = @transform_5, window_bounds = array<i64: 1, 128>}, {pipeline_mode = #tpu.pipeline_mode<synchronous>, transform_indices = @transform_6, window_bounds = array<i64: 8, 128>}]} {
    %c0_i32 = arith.constant 0 : i32
    %0 = arith.cmpi eq, %arg0, %c0_i32 : i32
    %1 = arith.extui %0 : i1 to i32
    %c0_i32_0 = arith.constant 0 : i32
    %2 = arith.cmpi ne, %1, %c0_i32_0 : i32
    scf.if %2 {
      %cst = arith.constant 0.000000e+00 : f32
      %12 = vector.broadcast %cst : f32 to vector<8x128xf32>
      %c0 = arith.constant 0 : index
      %c0_6 = arith.constant 0 : index
      %13 = vector.load %arg8[%c0, %c0_6] : memref<8x128xf32, #tpu.memory_space<vmem>>, vector<8x128xf32>
      tpu.vector_store %arg8[%c0, %c0_6], %12 {strides = array<i32>} : memref<8x128xf32, #tpu.memory_space<vmem>>, vector<8x128xf32>,
    } else {
    }
    %c1_i32 = arith.constant 1 : i32
    %3 = arith.cmpi slt, %arg0, %c1_i32 : i32
    %4 = arith.extui %3 : i1 to i32
    %c0_i32_1 = arith.constant 0 : i32
    %5 = arith.cmpi ne, %4, %c0_i32_1 : i32
    scf.if %5 {
      %c2_i32 = arith.constant 2 : i32
      %12 = arith.remsi %arg0, %c2_i32 : i32
      %c0 = arith.constant 0 : index
      %c0_6 = arith.constant 0 : index
      %c0_7 = arith.constant 0 : index
      %13 = vector.load %arg1[%c0, %c0_6, %c0_7] : memref<8x8x16xf32, #tpu.memory_space<vmem>>, vector<8x8x16xf32>
      %14 = vector.shape_cast %13 : vector<8x8x16xf32> to vector<64x16xf32>
      %c0_8 = arith.constant 0 : index
      %c0_9 = arith.constant 0 : index
      %15 = vector.load %arg2[%c0_8, %c0_9] : memref<16x128xf32, #tpu.memory_space<vmem>>, vector<16x128xf32>
      %cst = arith.constant dense<0.000000e+00> : vector<64x128xf32>
      %16 = tpu.matmul %14, %15, %cst {dimension_numbers = #tpu.dot_dimension_numbers<[1], [0], [0], [1], [0, 0, 1, 1], [], []>} : vector<64x16xf32>, vector<16x128xf32>, vector<64x128xf32> -> vector<64x128xf32>
      %c0_10 = arith.constant 0 : index
      %c0_11 = arith.constant 0 : index
      %17 = vector.load %arg4[%c0_10, %c0_11] : memref<1x128xf32, #tpu.memory_space<vmem>>, vector<1x128xf32>
      %18 = vector.broadcast %17 : vector<1x128xf32> to vector<64x128xf32>
      %19 = arith.addf %16, %18 : vector<64x128xf32>
      %20 = vector.shape_cast %19 : vector<64x128xf32> to vector<8x8x128xf32>
      %c8_i32 = arith.constant 8 : i32
      %21 = arith.muli %12, %c8_i32 : i32
      %22 = arith.index_cast %21 : i32 to index
      %c0_12 = arith.constant 0 : index
      %c0_13 = arith.constant 0 : index
      %23 = vector.load %arg9[%22, %c0_12, %c0_13] : memref<16x8x128xf32, #tpu.memory_space<vmem>>, vector<8x8x128xf32>
      tpu.vector_store %arg9[%22, %c0_12, %c0_13], %20 {strides = array<i32>} : memref<16x8x128xf32, #tpu.memory_space<vmem>>, vector<8x8x128xf32>,
    } else {
    }
    %c0_i32_2 = arith.constant 0 : i32
    %6 = arith.cmpi sgt, %arg0, %c0_i32_2 : i32
    %7 = arith.extui %6 : i1 to i32
    %c0_i32_3 = arith.constant 0 : i32
    %8 = arith.cmpi ne, %7, %c0_i32_3 : i32
    scf.if %8 {
      %c1_i32_6 = arith.constant 1 : i32
      %12 = arith.subi %arg0, %c1_i32_6 : i32
      %c2_i32 = arith.constant 2 : i32
      %13 = arith.remsi %12, %c2_i32 : i32
      %c8_i32 = arith.constant 8 : i32
      %14 = arith.muli %13, %c8_i32 : i32
      %c0 = arith.constant 0 : index
      %c0_7 = arith.constant 0 : index
      %15 = vector.load %arg3[%c0, %c0_7] : memref<128x128xf32, #tpu.memory_space<vmem>>, vector<128x128xf32>
      %c0_8 = arith.constant 0 : index
      %c0_9 = arith.constant 0 : index
      %16 = vector.load %arg8[%c0_8, %c0_9] : memref<8x128xf32, #tpu.memory_space<vmem>>, vector<8x128xf32>
      %c0_i32_10 = arith.constant 0 : i32
      %17 = arith.addi %14, %c0_i32_10 : i32
      %18 = arith.index_cast %17 : i32 to index
      %c0_11 = arith.constant 0 : index
      %c0_12 = arith.constant 0 : index
      %19 = vector.load %arg9[%18, %c0_11, %c0_12] : memref<16x8x128xf32, #tpu.memory_space<vmem>>, vector<1x8x128xf32>
      %20 = vector.shape_cast %19 : vector<1x8x128xf32> to vector<8x128xf32>
      %cst = arith.constant dense<0.000000e+00> : vector<8x128xf32>
      %21 = tpu.matmul %16, %15, %cst {dimension_numbers = #tpu.dot_dimension_numbers<[1], [0], [0], [1], [0, 0, 1, 1], [], []>} : vector<8x128xf32>, vector<128x128xf32>, vector<8x128xf32> -> vector<8x128xf32>
      %22 = arith.addf %20, %21 : vector<8x128xf32>
      %23 = math.tanh %22 : vector<8x128xf32>
      %c1_i32_13 = arith.constant 1 : i32
      %24 = arith.addi %14, %c1_i32_13 : i32
      %25 = arith.index_cast %24 : i32 to index
      %c0_14 = arith.constant 0 : index
      %c0_15 = arith.constant 0 : index
      %26 = vector.load %arg9[%25, %c0_14, %c0_15] : memref<16x8x128xf32, #tpu.memory_space<vmem>>, vector<1x8x128xf32>
      %27 = vector.shape_cast %26 : vector<1x8x128xf32> to vector<8x128xf32>
      %cst_16 = arith.constant dense<0.000000e+00> : vector<8x128xf32>
      %28 = tpu.matmul %23, %15, %cst_16 {dimension_numbers = #tpu.dot_dimension_numbers<[1], [0], [0], [1], [0, 0, 1, 1], [], []>} : vector<8x128xf32>, vector<128x128xf32>, vector<8x128xf32> -> vector<8x128xf32>
      %29 = arith.addf %27, %28 : vector<8x128xf32>
      %30 = math.tanh %29 : vector<8x128xf32>
      %c2_i32_17 = arith.constant 2 : i32
      %31 = arith.addi %14, %c2_i32_17 : i32
      %32 = arith.index_cast %31 : i32 to index
      %c0_18 = arith.constant 0 : index
      %c0_19 = arith.constant 0 : index
      %33 = vector.load %arg9[%32, %c0_18, %c0_19] : memref<16x8x128xf32, #tpu.memory_space<vmem>>, vector<1x8x128xf32>
      %34 = vector.shape_cast %33 : vector<1x8x128xf32> to vector<8x128xf32>
      %cst_20 = arith.constant dense<0.000000e+00> : vector<8x128xf32>
      %35 = tpu.matmul %30, %15, %cst_20 {dimension_numbers = #tpu.dot_dimension_numbers<[1], [0], [0], [1], [0, 0, 1, 1], [], []>} : vector<8x128xf32>, vector<128x128xf32>, vector<8x128xf32> -> vector<8x128xf32>
      %36 = arith.addf %34, %35 : vector<8x128xf32>
      %37 = math.tanh %36 : vector<8x128xf32>
      %c3_i32 = arith.constant 3 : i32
      %38 = arith.addi %14, %c3_i32 : i32
      %39 = arith.index_cast %38 : i32 to index
      %c0_21 = arith.constant 0 : index
      %c0_22 = arith.constant 0 : index
      %40 = vector.load %arg9[%39, %c0_21, %c0_22] : memref<16x8x128xf32, #tpu.memory_space<vmem>>, vector<1x8x128xf32>
      %41 = vector.shape_cast %40 : vector<1x8x128xf32> to vector<8x128xf32>
      %cst_23 = arith.constant dense<0.000000e+00> : vector<8x128xf32>
      %42 = tpu.matmul %37, %15, %cst_23 {dimension_numbers = #tpu.dot_dimension_numbers<[1], [0], [0], [1], [0, 0, 1, 1], [], []>} : vector<8x128xf32>, vector<128x128xf32>, vector<8x128xf32> -> vector<8x128xf32>
      %43 = arith.addf %41, %42 : vector<8x128xf32>
      %44 = math.tanh %43 : vector<8x128xf32>
      %c4_i32 = arith.constant 4 : i32
      %45 = arith.addi %14, %c4_i32 : i32
      %46 = arith.index_cast %45 : i32 to index
      %c0_24 = arith.constant 0 : index
      %c0_25 = arith.constant 0 : index
      %47 = vector.load %arg9[%46, %c0_24, %c0_25] : memref<16x8x128xf32, #tpu.memory_space<vmem>>, vector<1x8x128xf32>
      %48 = vector.shape_cast %47 : vector<1x8x128xf32> to vector<8x128xf32>
      %cst_26 = arith.constant dense<0.000000e+00> : vector<8x128xf32>
      %49 = tpu.matmul %44, %15, %cst_26 {dimension_numbers = #tpu.dot_dimension_numbers<[1], [0], [0], [1], [0, 0, 1, 1], [], []>} : vector<8x128xf32>, vector<128x128xf32>, vector<8x128xf32> -> vector<8x128xf32>
      %50 = arith.addf %48, %49 : vector<8x128xf32>
      %51 = math.tanh %50 : vector<8x128xf32>
      %c5_i32 = arith.constant 5 : i32
      %52 = arith.addi %14, %c5_i32 : i32
      %53 = arith.index_cast %52 : i32 to index
      %c0_27 = arith.constant 0 : index
      %c0_28 = arith.constant 0 : index
      %54 = vector.load %arg9[%53, %c0_27, %c0_28] : memref<16x8x128xf32, #tpu.memory_space<vmem>>, vector<1x8x128xf32>
      %55 = vector.shape_cast %54 : vector<1x8x128xf32> to vector<8x128xf32>
      %cst_29 = arith.constant dense<0.000000e+00> : vector<8x128xf32>
      %56 = tpu.matmul %51, %15, %cst_29 {dimension_numbers = #tpu.dot_dimension_numbers<[1], [0], [0], [1], [0, 0, 1, 1], [], []>} : vector<8x128xf32>, vector<128x128xf32>, vector<8x128xf32> -> vector<8x128xf32>
      %57 = arith.addf %55, %56 : vector<8x128xf32>
      %58 = math.tanh %57 : vector<8x128xf32>
      %c6_i32 = arith.constant 6 : i32
      %59 = arith.addi %14, %c6_i32 : i32
      %60 = arith.index_cast %59 : i32 to index
      %c0_30 = arith.constant 0 : index
      %c0_31 = arith.constant 0 : index
      %61 = vector.load %arg9[%60, %c0_30, %c0_31] : memref<16x8x128xf32, #tpu.memory_space<vmem>>, vector<1x8x128xf32>
      %62 = vector.shape_cast %61 : vector<1x8x128xf32> to vector<8x128xf32>
      %cst_32 = arith.constant dense<0.000000e+00> : vector<8x128xf32>
      %63 = tpu.matmul %58, %15, %cst_32 {dimension_numbers = #tpu.dot_dimension_numbers<[1], [0], [0], [1], [0, 0, 1, 1], [], []>} : vector<8x128xf32>, vector<128x128xf32>, vector<8x128xf32> -> vector<8x128xf32>
      %64 = arith.addf %62, %63 : vector<8x128xf32>
      %65 = math.tanh %64 : vector<8x128xf32>
      %c7_i32 = arith.constant 7 : i32
      %66 = arith.addi %14, %c7_i32 : i32
      %67 = arith.index_cast %66 : i32 to index
      %c0_33 = arith.constant 0 : index
      %c0_34 = arith.constant 0 : index
      %68 = vector.load %arg9[%67, %c0_33, %c0_34] : memref<16x8x128xf32, #tpu.memory_space<vmem>>, vector<1x8x128xf32>
      %69 = vector.shape_cast %68 : vector<1x8x128xf32> to vector<8x128xf32>
      %cst_35 = arith.constant dense<0.000000e+00> : vector<8x128xf32>
      %70 = tpu.matmul %65, %15, %cst_35 {dimension_numbers = #tpu.dot_dimension_numbers<[1], [0], [0], [1], [0, 0, 1, 1], [], []>} : vector<8x128xf32>, vector<128x128xf32>, vector<8x128xf32> -> vector<8x128xf32>
      %71 = arith.addf %69, %70 : vector<8x128xf32>
      %72 = math.tanh %71 : vector<8x128xf32>
      %c8_i32_36 = arith.constant 8 : i32
      %c0_37 = arith.constant 0 : index
      %c0_38 = arith.constant 0 : index
      %73 = vector.load %arg8[%c0_37, %c0_38] : memref<8x128xf32, #tpu.memory_space<vmem>>, vector<8x128xf32>
      tpu.vector_store %arg8[%c0_37, %c0_38], %72 {strides = array<i32>} : memref<8x128xf32, #tpu.memory_space<vmem>>, vector<8x128xf32>,
    } else {
    }
    %c1_i32_4 = arith.constant 1 : i32
    %9 = arith.cmpi eq, %arg0, %c1_i32_4 : i32
    %10 = arith.extui %9 : i1 to i32
    %c0_i32_5 = arith.constant 0 : i32
    %11 = arith.cmpi ne, %10, %c0_i32_5 : i32
    scf.if %11 {
      %c0 = arith.constant 0 : index
      %c0_6 = arith.constant 0 : index
      %12 = vector.load %arg8[%c0, %c0_6] : memref<8x128xf32, #tpu.memory_space<vmem>>, vector<8x128xf32>
      %c0_7 = arith.constant 0 : index
      %c0_8 = arith.constant 0 : index
      %13 = vector.load %arg5[%c0_7, %c0_8] : memref<128x128xf32, #tpu.memory_space<vmem>>, vector<128x128xf32>
      %cst = arith.constant dense<0.000000e+00> : vector<8x128xf32>
      %14 = tpu.matmul %12, %13, %cst {dimension_numbers = #tpu.dot_dimension_numbers<[1], [0], [0], [1], [0, 0, 1, 1], [], []>} : vector<8x128xf32>, vector<128x128xf32>, vector<8x128xf32> -> vector<8x128xf32>
      %c0_9 = arith.constant 0 : index
      %c0_10 = arith.constant 0 : index
      %15 = vector.load %arg6[%c0_9, %c0_10] : memref<1x128xf32, #tpu.memory_space<vmem>>, vector<1x128xf32>
      %16 = vector.broadcast %15 : vector<1x128xf32> to vector<8x128xf32>
      %17 = arith.addf %14, %16 : vector<8x128xf32>
      %c0_11 = arith.constant 0 : index
      %c0_12 = arith.constant 0 : index
      %18 = vector.load %arg7[%c0_11, %c0_12] : memref<8x128xf32, #tpu.memory_space<vmem>>, vector<8x128xf32>
      tpu.vector_store %arg7[%c0_11, %c0_12], %17 {strides = array<i32>} : memref<8x128xf32, #tpu.memory_space<vmem>>, vector<8x128xf32>,
    } else {
    }
    return
  }
  func.func @transform_0(%arg0: i32) -> (i32, i32, i32) {
    %c0_i32 = arith.constant 0 : i32
    %0 = arith.minsi %arg0, %c0_i32 : i32
    %c0_i32_0 = arith.constant 0 : i32
    %c0_i32_1 = arith.constant 0 : i32
    %c0_i32_2 = arith.constant 0 : i32
    return %0, %c0_i32_0, %c0_i32_1 : i32, i32, i32
  }
  func.func @transform_1(%arg0: i32) -> (i32, i32) {
    %c0_i32 = arith.constant 0 : i32
    %c0_i32_0 = arith.constant 0 : i32
    %c0_i32_1 = arith.constant 0 : i32
    return %c0_i32, %c0_i32_0 : i32, i32
  }
  func.func @transform_2(%arg0: i32) -> (i32, i32) {
    %c0_i32 = arith.constant 0 : i32
    %c0_i32_0 = arith.constant 0 : i32
    %c0_i32_1 = arith.constant 0 : i32
    return %c0_i32, %c0_i32_0 : i32, i32
  }
  func.func @transform_3(%arg0: i32) -> (i32, i32) {
    %c0_i32 = arith.constant 0 : i32
    %c0_i32_0 = arith.constant 0 : i32
    %c0_i32_1 = arith.constant 0 : i32
    return %c0_i32, %c0_i32_0 : i32, i32
  }
  func.func @transform_4(%arg0: i32) -> (i32, i32) {
    %c0_i32 = arith.constant 0 : i32
    %c0_i32_0 = arith.constant 0 : i32
    %c0_i32_1 = arith.constant 0 : i32
    return %c0_i32, %c0_i32_0 : i32, i32
  }
  func.func @transform_5(%arg0: i32) -> (i32, i32) {
    %c0_i32 = arith.constant 0 : i32
    %c0_i32_0 = arith.constant 0 : i32
    %c0_i32_1 = arith.constant 0 : i32
    return %c0_i32, %c0_i32_0 : i32, i32
  }
  func.func @transform_6(%arg0: i32) -> (i32, i32) {
    %c0_i32 = arith.constant 0 : i32
    %c0_i32_0 = arith.constant 0 : i32
    %c0_i32_1 = arith.constant 0 : i32
    return %c0_i32, %c0_i32_0 : i32, i32
  }
}

</mosaic_0001>

<bundles_post_ra>
// kernel: tpu_custom_call.1
= control target key start
LH: loop header
LB: loop body
LE: loop exit
PB: predicated region body
PF: predicated region fallthrough
CT: control target
= control target key end

     0   :  { %11 = vsyncpa [#allocation5], 0  ;;  %s2905_s0 = inlined_call_operand.hbm [shape: f32[8,8,16], index: 0, kind: input, shape index: {}]   ;;  %s2906_s1 = inlined_call_operand.hbm [shape: f32[16,128], index: 1, kind: input, shape index: {}]   ;;  %s2907_s2 = inlined_call_operand.hbm [shape: f32[128,128], index: 2, kind: input, shape index: {}]   ;;  %s2908_s3 = inlined_call_operand.vmem [shape: f32[1,128], index: 3, kind: input, shape index: {}]   ;;  %s2909_s4 = inlined_call_operand.hbm [shape: f32[128,128], index: 4, kind: input, shape index: {}]   ;;  %s2910_s5 = inlined_call_operand.vmem [shape: f32[1,128], index: 5, kind: input, shape index: {}]   ;;  %s2911_s6 = inlined_call_operand.hbm [shape: f32[8,128], index: 6, kind: output, shape index: {}]  }
   0x1   :  { %13 = vsyncpa [#allocation5 + $0x1], 0 }
   0x2   :  { %14 = vsyncpa [#allocation8], 0 }
   0x3   :  { %15 = vsyncpa [#allocation11], 0 }
   0x4   :  { %16 = vsyncpa [#allocation6], 0  ;;  %s2463_s21 = smov 0   ;;  %s2465_s22 = smov 0  }
   0x5   :  { %s2467_s23 = smov 0   ;;  %s2469_s24 = smov 0  }
   0x6 LB: > { %s2482_s25 = sadd.s32 4294967295, %s2412_s24   ;;  %p46_p0 = scmp.ne.s32.totalorder %s2404_s22, %s2400_s21  ;;  %s2412_s24 = sphi %s2469_s24, %s2930_s24   ;;  %s2408_s23 = sphi %s2467_s23, %s2929_s23   ;;  %s2404_s22 = sphi %s2465_s22, %s2928_s22   ;;  %s2400_s21 = sphi %s2463_s21, %s2927_s21  }
   0x7   : > { %p2912_p1 = scmp.eq.s32.totalorder %s2482_s25, 0  ;;  %p1339_p2 = scmp.ge.s32.totalorder %s2412_s24, 1 }
   0x8   : > { %p183_p3 = scmp.lt.s32.totalorder %s2412_s24, 3  ;;  %s2414_s28 = smov [#allocation7]  }
   0x9   : > { %p2491_p5 = por %p2912_p1, %p46_p0  ;;  %s195_s29 = sshll.u32 %s2414_s28, 4  ;;  %s2499_s29 = int_to_ptr.vmem [resolvable:$true] %s195_s29 }
   0xa   : > { %p2495_p6 = pnand %p1339_p2, %p183_p3  ;;  %s2415_s7 = smov [#allocation9]  }
   0xb   : > { %s2915_s26 = scalar_select %p2491_p5, 1, 0 }
   0xc   : > { %s2916_s27 = scalar_select %p2495_p6, 1, 0 }
   0xd   : > { %p2142_p7 = pneg %p2495_p6  ;;  %s208_s8 = sshll.u32 %s2415_s7, 4  ;;  %s2509_s8 = int_to_ptr.vmem [resolvable:$true] %s208_s8 }
   0xe   : > { %s2416_s9 = smov [#allocation10]   ;;  %s2226_s13 = scalar_lea.hbm %s2906_s1, 256 }
   0xf   : > { %p2505_p8 = pnand %p2142_p7, %p2912_p1  ;;  %s2511_s10 = sshll.u32 %s2416_s9, 4  ;;  %s225_s10 = int_to_ptr.vmem [resolvable:$true] %s2511_s10 }
  0x10   : > { %p2227_p9 = scmp.ne.s32.totalorder %s2906_s1, %s2226_s13  ;;  %p2233_p13 = scmp.lt.u32.totalorder %s2226_s13, %s2906_s1 }
  0x11   : > { %p2521_p10 = pneg %p2505_p8 }
  0x13   : > { %p2229_p11 = pnand %p2521_p10, %p2227_p9 }
  0x15   : > { %p2230_p12 = pneg %p2229_p11 }
  0x17   : > { %p2235_p0 = pnand %p2233_p13, %p2230_p12 }
  0x19   : > { %2238 = shalt.err (!%p2235_p0)
}
  0x1a   : > { %s2239_s19 = scalar_lea.vmem %s2499_s29, 256  ;;  %p2247_p4 = scmp.lt.s32.totalorder %s2499_s29, %s2499_s29 }
  0x1b   : > { %p2240_p2 = scmp.ne.s32.totalorder %s2499_s29, %s2239_s19  ;;  %p2248_p1 = scmp.lt.s32.totalorder %s2239_s19, %s2239_s19 }
  0x1d   : > { %p2242_p3 = pnand %p2240_p2, %p2521_p10  ;;  %p2249_p9 = por %p2248_p1, %p2247_p4 }
  0x1f   : > { %p2243_p7 = pneg %p2242_p3 }
  0x21   : > { %p2250_p11 = pnand %p2249_p9, %p2243_p7 }
  0x23   : > { %2253 = shalt.err (!%p2250_p11)
}
  0x24   : > { %s2417_s20 = smov 128   ;;  %s2418_s21 = smov 8  }
  0x25   : > { %2145 = dma.hbm_to_vmem [thread:$0]  (!%p2505_p8), %s2906_s1, 256, %s2499_s29, [#allocation8], %s2417_s20, %s2417_s20, %s2418_s21  }
  0x26   : > { %s2254_s12 = scalar_lea.hbm %s2907_s2, 2048 }
  0x27   : > { %p2255_p1 = scmp.ne.s32.totalorder %s2907_s2, %s2254_s12  ;;  %p2261_p13 = scmp.lt.u32.totalorder %s2254_s12, %s2907_s2 }
  0x29   : > { %p2257_p4 = pnand %p2255_p1, %p2521_p10 }
  0x2b   : > { %p2258_p12 = pneg %p2257_p4 }
  0x2d   : > { %p2263_p0 = pnand %p2261_p13, %p2258_p12 }
  0x2f   : > { %2266 = shalt.err (!%p2263_p0)
}
  0x30   : > { %s2267_s29 = scalar_lea.vmem %s2509_s8, 2048  ;;  %p2275_p9 = scmp.lt.s32.totalorder %s2509_s8, %s2509_s8 }
  0x31   : > { %p2268_p2 = scmp.ne.s32.totalorder %s2509_s8, %s2267_s29  ;;  %p2276_p11 = scmp.lt.s32.totalorder %s2267_s29, %s2267_s29 }
  0x33   : > { %p2270_p3 = pnand %p2268_p2, %p2521_p10  ;;  %p2277_p1 = por %p2276_p11, %p2275_p9 }
  0x35   : > { %p2271_p7 = pneg %p2270_p3 }
  0x37   : > { %p2278_p4 = pnand %p2277_p1, %p2271_p7 }
  0x39   : > { %2281 = shalt.err (!%p2278_p4)
}
  0x3a   : > { %2148 = dma.hbm_to_vmem [thread:$0]  (!%p2505_p8), %s2907_s2, 2048, %s2509_s8, [#allocation8], %s2417_s20, %s2417_s20, %s2418_s21  }
  0x3b   : > { %s2282_s9 = scalar_lea.hbm %s2909_s4, 2048 }
  0x3c   : > { %p2283_p12 = scmp.ne.s32.totalorder %s2909_s4, %s2282_s9  ;;  %p2289_p2 = scmp.lt.u32.totalorder %s2282_s9, %s2909_s4 }
  0x3e   : > { %p2285_p13 = pnand %p2283_p12, %p2521_p10 }
  0x40   : > { %p2286_p0 = pneg %p2285_p13 }
  0x42   : > { %p2291_p3 = pnand %p2289_p2, %p2286_p0 }
  0x44   : > { %2294 = shalt.err (!%p2291_p3)
}
  0x45   : > { %s2295_s15 = scalar_lea.vmem %s225_s10, 2048  ;;  %p2303_p1 = scmp.lt.s32.totalorder %s225_s10, %s225_s10 }
  0x46   : > { %p2296_p7 = scmp.ne.s32.totalorder %s225_s10, %s2295_s15  ;;  %p2304_p4 = scmp.lt.s32.totalorder %s2295_s15, %s2295_s15 }
  0x48   : > { %p2298_p9 = pnand %p2296_p7, %p2521_p10  ;;  %p2305_p5 = por %p2304_p4, %p2303_p1 }
  0x4a   : > { %p2299_p11 = pneg %p2298_p9 }
  0x4c   : > { %p2306_p6 = pnand %p2305_p5, %p2299_p11 }
  0x4e   : > { %2309 = shalt.err (!%p2306_p6)
}
  0x4f   : > { %2151 = dma.hbm_to_vmem [thread:$0]  (!%p2505_p8), %s2909_s4, 2048, %s225_s10, [#allocation11], %s2417_s20, %s2417_s20, %s2418_s21  }
  0x50   : > { %s2594_s16 = sadd.s32 1, %s2412_s24   ;;  %p26_p5 = scmp.lt.s32.totalorder %s2412_s24, 0 }
  0x51   : > { %p28_p6 = scmp.lt.s32.totalorder %s2594_s16, 0  ;;  %s33_s30 = sadd.s32 1, %s2408_s23 }
  0x52   : > { %p40_p10 = scmp.ne.s32.totalorder %s2408_s23, %s2404_s22  ;;  %p41_p12 = scmp.eq.s32.totalorder %s2412_s24, 0 }
  0x53   : > { %s27_s29 = scalar_select %p26_p5, %s2412_s24, 0 }
  0x54   : > { %s29_s18 = scalar_select %p28_p6, %s2594_s16, 0 }
  0x55   : > { %p2159_p13 = scmp.lt.s32.totalorder %s2412_s24, 2  ;;  %s241_s28 = sand.u32 1, %s2408_s23  }
  0x56   : > { %s30_s19 = ssub.s32 %s27_s29, %s29_s18  ;;  %p42_p2 = por %p41_p12, %p40_p10 }
  0x57   : > { %p31_p0 = scmp.eq.s32.totalorder %s30_s19, 0  ;;  %s1344_s7 = sshll.u32 %s241_s28, 6 }
  0x58   : > { %s1398_s10 = sshll.u32 %s27_s29, 10  ;;  %s245_s14 = scalar_lea.vmem [#allocation4], %s1344_s7 }
  0x59   : > { %s2607_s9 = scalar_select %p31_p0, %s2408_s23, %s33_s30  }
  0x5a   : > { %s2612_s13 = scalar_lea.hbm %s2905_s0, %s1398_s10  ;;  %s254_s15 = sshll.u32 %s245_s14, 4  ;;  %s2614_s15 = int_to_ptr.vmem [resolvable:$true] %s254_s15 }
  0x5b   : > { %p2616_p8 = pnand %p2159_p13, %p42_p2  ;;  %s2620_s8 = scalar_lea.sflag [#allocation5], %s241_s28 }
  0x5c   : > { %s2310_s17 = scalar_lea.hbm %s2612_s13, 1024  ;;  %s2315_s18 = scalar_lea.hbm %s2905_s0, 1024 }
  0x5d   : > { %p2311_p3 = scmp.ne.s32.totalorder %s2612_s13, %s2310_s17  ;;  %p2312_p7 = pneg %p2616_p8 }
  0x5e   : > { %p2316_p1 = scmp.lt.u32.totalorder %s2612_s13, %s2905_s0  ;;  %p2317_p4 = scmp.lt.u32.totalorder %s2315_s18, %s2310_s17 }
  0x5f   : > { %p2313_p9 = pnand %p2312_p7, %p2311_p3  ;;  %p2319_p6 = scmp.lt.u32.totalorder %s2310_s17, %s2612_s13 }
  0x60   : > { %p2318_p5 = por %p2317_p4, %p2316_p1 }
  0x61   : > { %p2314_p11 = pneg %p2313_p9 }
  0x62   : > { %p2320_p10 = por %p2319_p6, %p2318_p5 }
  0x64   : > { %p2321_p12 = pnand %p2320_p10, %p2314_p11 }
  0x66   : > { %2324 = shalt.err (!%p2321_p12)
}
  0x67   : > { %s2325_s28 = scalar_lea.vmem %s2614_s15, 1024  ;;  %s2419_s10 = smov [#allocation4]  }
  0x68   : > { %p2326_p13 = scmp.ne.s32.totalorder %s2614_s15, %s2325_s28  ;;  %s2330_s11 = sshll.u32 %s2419_s10, 4  ;;  %s2331_s11 = int_to_ptr.vmem [resolvable:$false] %s2330_s11 }
  0x69   : > { %s2332_s12 = scalar_lea.vmem %s2331_s11, 2048  ;;  %p2333_p3 = scmp.lt.s32.totalorder %s2614_s15, %s2331_s11 }
  0x6a   : > { %p2328_p0 = pnand %p2326_p13, %p2312_p7  ;;  %p2334_p9 = scmp.lt.s32.totalorder %s2332_s12, %s2325_s28 }
  0x6c   : > { %p2329_p2 = pneg %p2328_p0  ;;  %p2335_p1 = por %p2334_p9, %p2333_p3 }
  0x6e   : > { %p2336_p4 = pnand %p2335_p1, %p2329_p2 }
  0x70   : > { %2339 = shalt.err (!%p2336_p4)
}
  0x71   : > { %2155 = dma.hbm_to_vmem [thread:$0]  (!%p2616_p8), %s2612_s13, 1024, %s2614_s15, %s2620_s8, %s2417_s20, %s2417_s20, %s2418_s21  }
  0x72   : > { %p2920_p7 = scmp.ne.s32.totalorder %s2916_s27, 0 }
  0x73   : > { %s268_s14 = sand.u32 (!%p2920_p7), 1, %s2404_s22   ;;  %p2921_p11 = scmp.ne.s32.totalorder (!%p2920_p7), %s2915_s26, 0 }
  0x74   : > { %266 = sbr.rel (%p2920_p7) target bundleno = 2479 (0x9af), region = 44  ;;  %s1348_s17 = sshll.u32 (!%p2920_p7), %s268_s14, 6 }
  0x75   : > { %s269_s30 = scalar_lea.sflag (!%p2920_p7), [#allocation5], %s268_s14  ;;  %s2654_s29 = scalar_lea.vmem (!%p2920_p7), [#allocation4], %s1348_s17 }
  0x7b   : > { %2383 = dma.done.wait (%p2921_p11), %s269_s30, 1024  }
  0x7c   : > { %2385 = vsyncadd (%p2921_p11), %s269_s30, 4294966272  ;;  %p2922_p5 = scmp.eq.s32.totalorder %s2482_s25, 0 }
  0x7e   : > { %2387 = dma.done.wait (%p2922_p5), [#allocation8], 2304   ;;  %p2923_p8 = pmov %p2922_p5 }
  0x7f   : > { %p2924_p6 = pmov %p2922_p5 }
  0x80   : > { %2389 = vsyncadd (%p2923_p8), [#allocation8], 4294964992 }
  0x81   : > { %2391 = dma.done.wait (%p2924_p6), [#allocation11], 2048   ;;  %p2925_p10 = pmov %p2922_p5 }
  0x82   : > { %p2926_p12 = scmp.ne.s32.totalorder %s2482_s25, 0 }
  0x83   : > { %2393 = vsyncadd (%p2925_p10), [#allocation11], 4294965248  ;;  %v2420_v0 = vmov (!%p2926_p12), 0.0  }
  0x84   : > { %314 = sbr.rel (%p2926_p12) target bundleno = 139 (0x8b), region = 64  ;;  %315 = vst [vmem:[#allocation2] sm:$0xff] (!%p2926_p12), %v2420_v0 }
  0x8b PF: > { %p1353_p13 = scmp.ge.s32.totalorder %s2482_s25, 1 }
  0x8c   : > { %v334_v1 = vld [vmem:[#allocation7] sm:$0xff] (!%p1353_p13)  ;;  %v335_v2 = vld [vmem:[#allocation7 + $0x8] sm:$0xff] (!%p1353_p13)  ;;  %vm343_vm0 = vcmask (!%p1353_p13), 130048   ;;  %v328_v8 = vld [vmem:[%s2654_s29 + $0x10] sm:$0xff] (!%p1353_p13)  ;;  %s321_s26 = ssub.s32 (!%p1353_p13), 0, %s2482_s25  ;;  %p320_p0 = scmp.lt.s32.totalorder (!%p1353_p13), %s2482_s25, 0 }
  0x8d   : > { %319 = sbr.rel (%p1353_p13) target bundleno = 368 (0x170), region = 68  ;;  %v326_v3 = vld [vmem:[%s2654_s29] sm:$0xff] (!%p1353_p13)  ;;  %v1902_v4 = vpack.c.bf16 (!%p1353_p13), %v335_v2, %v334_v1  ;;  %v327_v6 = vld [vmem:[%s2654_s29 + $0x8] sm:$0xff] (!%p1353_p13)  ;;  %v332_v9 = vld [vmem:[%s2654_s29 + $0x30] sm:$0xff] (!%p1353_p13)  ;;  %s1354_s27 = smin.u32 (!%p1353_p13), %s2482_s25, %s321_s26 }
  0x8e   : > { %1575 = vmatprep.mubr.msk.f32.mxu0 (!%p1353_p13), %vm343_vm0, %v326_v3  ;;  %v330_v5 = vld [vmem:[%s2654_s29 + $0x20] sm:$0xff] (!%p1353_p13)  ;;  %v331_v7 = vld [vmem:[%s2654_s29 + $0x28] sm:$0xff] (!%p1353_p13)  ;;  %v329_v10 = vld [vmem:[%s2654_s29 + $0x18] sm:$0xff] (!%p1353_p13)  ;;  %s323_s20 = sand.u32 (!%p1353_p13), 1, %s1354_s27  }
  0x8f   : > { %1581 = vmatprep.mubr.msk.f32.mxu1 (!%p1353_p13), %vm343_vm0, %v330_v5  ;;  %1903 = vmatprep.subr.bf16.mxu0 (!%p1353_p13), %v1902_v4  ;;  %v333_v11 = vld [vmem:[%s2654_s29 + $0x38] sm:$0xff] (!%p1353_p13)  ;;  %s324_s21 = ssub.s32 (!%p1353_p13), 0, %s323_s20 }
  0x90   : > { %2122 = vmatprep.subr.bf16.mxu1 (!%p1353_p13), %v1902_v4  ;;  %1905 = vmatpush3.bf16.msra.mxu0 (!%p1353_p13), %v1902_v4  ;;  %v1355_v12 = vld [vmem:[%s2908_s3] ss:$0 sm:$0xff] (!%p1353_p13) }
  0x91   : > { %2123 = vmatpush3.bf16.msra.mxu1 (!%p1353_p13), %v1902_v4 }
  0x93   : > { %1576 = vmatmul.mubr.msk.f32.vlgmr.msra.gmra.mrb[0].mxu0 (!%p1353_p13), %vm343_vm0, %v327_v6 }
  0x94   : > { %1582 = vmatmul.mubr.msk.f32.vlgmr.msra.gmra.mrb[0].mxu1 %vm343_vm0, %v331_v7  ;;  %1578 = vmatprep.mubr.msk.f32.mxu0 %vm343_vm0, %v328_v8  ;;  %s2932_s21 = smov (!%p320_p0, %s324_s21), %s323_s20 }
  0x95   : > { %1584 = vmatprep.mubr.msk.f32.mxu1 %vm343_vm0, %v332_v9  ;;  %s1399_s13 = sshll.u32 %s2932_s21, 6 }
  0x96   : > { %s475_s8 = scalar_lea.vmem [#allocation3], %s1399_s13 }
  0x97   : > { %1579 = vmatmul.mubr.msk.f32.gmra.mrb[2].mxu0 %vm343_vm0, %v329_v10 }
  0x98   : > { %1585 = vmatmul.mubr.msk.f32.gmra.mrb[2].mxu1 %vm343_vm0, %v333_v11 }
 0x166   : > { %v1577_v13 = vpop.f32.mrb[0].mxu0 }
 0x167   : > { %v1583_v14 = vpop.f32.mrb[0].mxu1  ;;  %v440_v15 = vadd.f32 %v1577_v13, %v1355_v12  ;;  %v434_v17 = vpop.f32.mrb[1].mxu0 }
 0x168   : > { %v460_v16 = vadd.f32 %v1583_v14, %v1355_v12  ;;  %v454_v18 = vpop.f32.mrb[1].mxu1  ;;  %v435_v19 = vadd.f32 %v1355_v12, %v434_v17 }
 0x169   : > { %v455_v20 = vadd.f32 %v1355_v12, %v454_v18  ;;  %477 = vst [vmem:[%s475_s8 + $0x8] sm:$0xff] %v440_v15 }
 0x16a   : > { %481 = vst [vmem:[%s475_s8 + $0x28] sm:$0xff] %v460_v16  ;;  %476 = vst [vmem:[%s475_s8] sm:$0xff] %v435_v19  ;;  %v1580_v21 = vpop.f32.mrb[2].mxu0 }
 0x16b   : > { %480 = vst [vmem:[%s475_s8 + $0x20] sm:$0xff] %v455_v20  ;;  %v1586_v22 = vpop.f32.mrb[2].mxu1  ;;  %v450_v23 = vadd.f32 %v1580_v21, %v1355_v12  ;;  %v444_v25 = vpop.f32.mrb[3].mxu0 }
 0x16c   : > { %v470_v24 = vadd.f32 %v1586_v22, %v1355_v12  ;;  %v464_v26 = vpop.f32.mrb[3].mxu1  ;;  %v445_v27 = vadd.f32 %v1355_v12, %v444_v25 }
 0x16d   : > { %v465_v28 = vadd.f32 %v1355_v12, %v464_v26  ;;  %479 = vst [vmem:[%s475_s8 + $0x18] sm:$0xff] %v450_v23 }
 0x16e   : > { %483 = vst [vmem:[%s475_s8 + $0x38] sm:$0xff] %v470_v24  ;;  %478 = vst [vmem:[%s475_s8 + $0x10] sm:$0xff] %v445_v27 }
 0x16f   : > { %482 = vst [vmem:[%s475_s8 + $0x30] sm:$0xff] %v465_v28 }
 0x170 PF: > { %p1366_p2 = scmp.le.s32.totalorder %s2482_s25, 0 }
 0x171   : > { %v496_v29 = vld [vmem:[#allocation9] sm:$0xff] (!%p1366_p2)  ;;  %v497_v30 = vld [vmem:[#allocation9 + $0x8] sm:$0xff] (!%p1366_p2)  ;;  %v498_v31 = vld [vmem:[#allocation9 + $0x10] sm:$0xff] (!%p1366_p2)  ;;  %v2421_v32 = vmov (!%p1366_p2), 0.0|0.0   ;;  %vm2422_vm1 = vmmov (!%p1366_p2), 0   ;;  %v2423_v35 = vmov (!%p1366_p2), 0.0  }
 0x172   : > { %487 = sbr.rel (%p1366_p2) target bundleno = 2204 (0x89c), region = 72  ;;  %1906 = vmatprep.subr.bf16.mxu0 (!%p1366_p2), %v2421_v32  ;;  %v2695_v33 = vpack.c.bf16 (!%p1366_p2), %v497_v30, %v496_v29  ;;  %v499_v34 = vld [vmem:[#allocation9 + $0x18] sm:$0xff] (!%p1366_p2)  ;;  %1619 = vmatprep.mubr.msk.f32.mxu0 (!%p1366_p2), %vm2422_vm1, %v2423_v35  ;;  %v500_v37 = vld [vmem:[#allocation9 + $0x20] sm:$0xff] (!%p1366_p2)  ;;  %v501_v38 = vld [vmem:[#allocation9 + $0x28] sm:$0xff] (!%p1366_p2)  ;;  %s1367_s18 = sadd.s32 (!%p1366_p2), 4294967295, %s2482_s25 }
 0x173   : > { %1930 = vmatprep.subr.bf16.mxu1 (!%p1366_p2), %v2421_v32  ;;  %1654 = vmatprep.mubr.msk.f32.mxu1 (!%p1366_p2), %vm2422_vm1, %v2423_v35  ;;  %v2703_v36 = vpack.c.bf16 (!%p1366_p2), %v499_v34, %v498_v31  ;;  %v2709_v39 = vpack.c.bf16 (!%p1366_p2), %v501_v38, %v500_v37  ;;  %v502_v40 = vld [vmem:[#allocation9 + $0x30] sm:$0xff] (!%p1366_p2)  ;;  %v503_v41 = vld [vmem:[#allocation9 + $0x38] sm:$0xff] (!%p1366_p2)  ;;  %v504_v43 = vld [vmem:[#allocation9 + $0x40] sm:$0xff] (!%p1366_p2)  ;;  %s490_s19 = ssub.s32 (!%p1366_p2), 0, %s1367_s18  ;;  %p489_p3 = scmp.lt.s32.totalorder (!%p1366_p2), %s1367_s18, 0 }
 0x174   : > { %1908 = vmatpush3.bf16.msra.mxu0 (!%p1366_p2), %v2695_v33  ;;  %1932 = vmatpush3.bf16.msra.mxu1 (!%p1366_p2), %v2695_v33  ;;  %v2715_v42 = vpack.c.bf16 (!%p1366_p2), %v503_v41, %v502_v40  ;;  %v505_v44 = vld [vmem:[#allocation9 + $0x48] sm:$0xff] (!%p1366_p2)  ;;  %v506_v46 = vld [vmem:[#allocation9 + $0x50] sm:$0xff] (!%p1366_p2)  ;;  %v507_v47 = vld [vmem:[#allocation9 + $0x58] sm:$0xff] (!%p1366_p2)  ;;  %s1368_s7 = smin.u32 (!%p1366_p2), %s1367_s18, %s490_s19 }
 0x175   : > { %1909 = vmatprep.subr.bf16.mxu0 (!%p1366_p2), %v2421_v32  ;;  %1933 = vmatprep.subr.bf16.mxu1 (!%p1366_p2), %v2421_v32  ;;  %v2721_v45 = vpack.c.bf16 (!%p1366_p2), %v505_v44, %v504_v43  ;;  %v2727_v48 = vpack.c.bf16 (!%p1366_p2), %v507_v47, %v506_v46  ;;  %v508_v49 = vld [vmem:[#allocation9 + $0x60] sm:$0xff] (!%p1366_p2)  ;;  %v509_v50 = vld [vmem:[#allocation9 + $0x68] sm:$0xff] (!%p1366_p2)  ;;  %v510_v52 = vld [vmem:[#allocation9 + $0x70] sm:$0xff] (!%p1366_p2)  ;;  %s492_s28 = sand.u32 (!%p1366_p2), 1, %s1368_s7  }
 0x176   : > { %v2733_v51 = vpack.c.bf16 (!%p1366_p2), %v509_v50, %v508_v49  ;;  %v511_v53 = vld [vmem:[#allocation9 + $0x78] sm:$0xff] (!%p1366_p2)  ;;  %v512_v55 = vld [vmem:[#allocation2] sm:$0xff] (!%p1366_p2)  ;;  %s493_s10 = ssub.s32 (!%p1366_p2), 0, %s492_s28 }
 0x177   : > { %v2739_v54 = vpack.c.bf16 (!%p1366_p2), %v511_v53, %v510_v52 }
 0x178   : > { %1911 = vmatpush3.bf16.msra.mxu0 (!%p1366_p2), %v2703_v36  ;;  %1935 = vmatpush3.bf16.msra.mxu1 (!%p1366_p2), %v2703_v36 }
 0x179   : > { %1912 = vmatprep.subr.bf16.mxu0 %v2421_v32  ;;  %1936 = vmatprep.subr.bf16.mxu1 %v2421_v32  ;;  %s2934_s10 = smov (!%p489_p3, %s493_s10), %s492_s28 }
 0x17a   : > { %s1400_s11 = sshll.u32 %s2934_s10, 6 }
 0x17b   : > { %s2767_s12 = scalar_lea.vmem [#allocation3], %s1400_s11 }
 0x17c   : > { %1914 = vmatpush3.bf16.msra.mxu0 %v2709_v39  ;;  %1938 = vmatpush3.bf16.msra.mxu1 %v2709_v39  ;;  %v515_v56 = vld [vmem:[%s2767_s12] sm:$0xff]  ;;  %v1373_v61 = vld [vmem:[%s2767_s12 + $0x8] sm:$0xff]  ;;  %v1376_v2 = vld [vmem:[%s2767_s12 + $0x10] sm:$0xff] }
 0x17d   : > { %1915 = vmatprep.subr.bf16.mxu0 %v2421_v32  ;;  %1939 = vmatprep.subr.bf16.mxu1 %v2421_v32  ;;  %v1379_v7 = vld [vmem:[%s2767_s12 + $0x18] sm:$0xff]  ;;  %v1382_v12 = vld [vmem:[%s2767_s12 + $0x20] sm:$0xff]  ;;  %v1385_v17 = vld [vmem:[%s2767_s12 + $0x28] sm:$0xff] }
 0x17e   : > { %v1388_v22 = vld [vmem:[%s2767_s12 + $0x30] sm:$0xff]  ;;  %v1391_v27 = vld [vmem:[%s2767_s12 + $0x38] sm:$0xff] }
 0x180   : > { %1917 = vmatpush3.bf16.msra.mxu0 %v2715_v42  ;;  %1941 = vmatpush3.bf16.msra.mxu1 %v2715_v42 }
 0x181   : > { %1918 = vmatprep.subr.bf16.mxu0 %v2421_v32  ;;  %1942 = vmatprep.subr.bf16.mxu1 %v2421_v32 }
 0x184   : > { %1920 = vmatpush3.bf16.msra.mxu0 %v2721_v45  ;;  %1944 = vmatpush3.bf16.msra.mxu1 %v2721_v45 }
 0x185   : > { %1921 = vmatprep.subr.bf16.mxu0 %v2421_v32  ;;  %1945 = vmatprep.subr.bf16.mxu1 %v2421_v32 }
 0x188   : > { %1923 = vmatpush3.bf16.msra.mxu0 %v2727_v48  ;;  %1947 = vmatpush3.bf16.msra.mxu1 %v2727_v48 }
 0x189   : > { %1924 = vmatprep.subr.bf16.mxu0 %v2421_v32  ;;  %1948 = vmatprep.subr.bf16.mxu1 %v2421_v32 }
 0x18c   : > { %1926 = vmatpush3.bf16.msra.mxu0 %v2733_v51  ;;  %1950 = vmatpush3.bf16.msra.mxu1 %v2733_v51 }
 0x18d   : > { %1927 = vmatprep.subr.bf16.mxu0 %v2421_v32  ;;  %1951 = vmatprep.subr.bf16.mxu1 %v2421_v32 }
 0x190   : > { %1929 = vmatpush3.bf16.msra.mxu0 %v2739_v54  ;;  %1953 = vmatpush3.bf16.msra.mxu1 %v2739_v54 }
 0x191   : > { %1954 = vmatprep.subr.bf16.mxu0 %v2421_v32  ;;  %1978 = vmatprep.subr.bf16.mxu1 %v2421_v32 }
 0x193   : > { %1620 = vmatmul.mubr.f32.vlgmr.msra.gmra.mrb[0].mxu0 %v512_v55 }
 0x194   : > { %1956 = vmatpush3.bf16.msra.mxu0 %v2695_v33  ;;  %1689 = vmatprep.mubr.msk.f32.mxu0 %vm2422_vm1, %v2423_v35 }
 0x195   : > { %1957 = vmatprep.subr.bf16.mxu0 %v2421_v32 }
 0x198   : > { %1959 = vmatpush3.bf16.msra.mxu0 %v2703_v36 }
 0x199   : > { %1960 = vmatprep.subr.bf16.mxu0 %v2421_v32 }
 0x19c   : > { %1962 = vmatpush3.bf16.msra.mxu0 %v2709_v39 }
 0x19d   : > { %1963 = vmatprep.subr.bf16.mxu0 %v2421_v32 }
 0x1a0   : > { %1965 = vmatpush3.bf16.msra.mxu0 %v2715_v42 }
 0x1a1   : > { %1966 = vmatprep.subr.bf16.mxu0 %v2421_v32 }
 0x1a4   : > { %1968 = vmatpush3.bf16.msra.mxu0 %v2721_v45 }
 0x1a5   : > { %1969 = vmatprep.subr.bf16.mxu0 %v2421_v32 }
 0x1a8   : > { %1971 = vmatpush3.bf16.msra.mxu0 %v2727_v48 }
 0x1a9   : > { %1972 = vmatprep.subr.bf16.mxu0 %v2421_v32 }
 0x1ac   : > { %1974 = vmatpush3.bf16.msra.mxu0 %v2733_v51 }
 0x1ad   : > { %1975 = vmatprep.subr.bf16.mxu0 %v2421_v32 }
 0x1b0   : > { %1977 = vmatpush3.bf16.msra.mxu0 %v2739_v54 }
 0x1b1   : > { %2002 = vmatprep.subr.bf16.mxu0 %v2421_v32 }
 0x266   : > { %v582_v57 = vpop.f32.mrb[0].mxu0 }
 0x267   : > { %v586_v58 = vadd.f32 %v582_v57, %v515_v56  ;;  %v1621_v59 = vpop.f32.mrb[1].mxu0 }
 0x269   : > { %2210 = vtanh.f32 %v586_v58 }
 0x273   : > { %v2211_v60 = vpop.eup %2210 }
 0x274   : > { %1655 = vmatmul.mubr.f32.vlgmr.msra.gmra.mrb[0].mxu1 %v2211_v60 }
 0x275   : > { %1980 = vmatpush3.bf16.msra.mxu1 %v2695_v33  ;;  %1724 = vmatprep.mubr.msk.f32.mxu1 %vm2422_vm1, %v2423_v35 }
 0x276   : > { %1981 = vmatprep.subr.bf16.mxu1 %v2421_v32 }
 0x279   : > { %1983 = vmatpush3.bf16.msra.mxu1 %v2703_v36 }
 0x27a   : > { %1984 = vmatprep.subr.bf16.mxu1 %v2421_v32 }
 0x27d   : > { %1986 = vmatpush3.bf16.msra.mxu1 %v2709_v39 }
 0x27e   : > { %1987 = vmatprep.subr.bf16.mxu1 %v2421_v32 }
 0x281   : > { %1989 = vmatpush3.bf16.msra.mxu1 %v2715_v42 }
 0x282   : > { %1990 = vmatprep.subr.bf16.mxu1 %v2421_v32 }
 0x285   : > { %1992 = vmatpush3.bf16.msra.mxu1 %v2721_v45 }
 0x286   : > { %1993 = vmatprep.subr.bf16.mxu1 %v2421_v32 }
 0x289   : > { %1995 = vmatpush3.bf16.msra.mxu1 %v2727_v48 }
 0x28a   : > { %1996 = vmatprep.subr.bf16.mxu1 %v2421_v32 }
 0x28d   : > { %1998 = vmatpush3.bf16.msra.mxu1 %v2733_v51 }
 0x28e   : > { %1999 = vmatprep.subr.bf16.mxu1 %v2421_v32 }
 0x291   : > { %2001 = vmatpush3.bf16.msra.mxu1 %v2739_v54 }
 0x292   : > { %2026 = vmatprep.subr.bf16.mxu1 %v2421_v32 }
 0x347   : > { %v658_v62 = vpop.f32.mrb[0].mxu1 }
 0x348   : > { %v662_v63 = vadd.f32 %v1373_v61, %v658_v62  ;;  %v1656_v0 = vpop.f32.mrb[1].mxu1 }
 0x34a   : > { %2212 = vtanh.f32 %v662_v63 }
 0x354   : > { %v2213_v1 = vpop.eup %2212 }
 0x355   : > { %1690 = vmatmul.mubr.f32.vlgmr.msra.gmra.mrb[2].mxu0 %v2213_v1 }
 0x356   : > { %2004 = vmatpush3.bf16.msra.mxu0 %v2695_v33  ;;  %1759 = vmatprep.mubr.msk.f32.mxu0 %vm2422_vm1, %v2423_v35 }
 0x357   : > { %2005 = vmatprep.subr.bf16.mxu0 %v2421_v32 }
 0x35a   : > { %2007 = vmatpush3.bf16.msra.mxu0 %v2703_v36 }
 0x35b   : > { %2008 = vmatprep.subr.bf16.mxu0 %v2421_v32 }
 0x35e   : > { %2010 = vmatpush3.bf16.msra.mxu0 %v2709_v39 }
 0x35f   : > { %2011 = vmatprep.subr.bf16.mxu0 %v2421_v32 }
 0x362   : > { %2013 = vmatpush3.bf16.msra.mxu0 %v2715_v42 }
 0x363   : > { %2014 = vmatprep.subr.bf16.mxu0 %v2421_v32 }
 0x366   : > { %2016 = vmatpush3.bf16.msra.mxu0 %v2721_v45 }
 0x367   : > { %2017 = vmatprep.subr.bf16.mxu0 %v2421_v32 }
 0x36a   : > { %2019 = vmatpush3.bf16.msra.mxu0 %v2727_v48 }
 0x36b   : > { %2020 = vmatprep.subr.bf16.mxu0 %v2421_v32 }
 0x36e   : > { %2022 = vmatpush3.bf16.msra.mxu0 %v2733_v51 }
 0x36f   : > { %2023 = vmatprep.subr.bf16.mxu0 %v2421_v32 }
 0x372   : > { %2025 = vmatpush3.bf16.msra.mxu0 %v2739_v54 }
 0x373   : > { %2050 = vmatprep.subr.bf16.mxu0 %v2421_v32 }
 0x428   : > { %v734_v3 = vpop.f32.mrb[2].mxu0 }
 0x429   : > { %v738_v4 = vadd.f32 %v1376_v2, %v734_v3  ;;  %v1691_v5 = vpop.f32.mrb[3].mxu0 }
 0x42b   : > { %2214 = vtanh.f32 %v738_v4 }
 0x435   : > { %v2215_v6 = vpop.eup %2214 }
 0x436   : > { %1725 = vmatmul.mubr.f32.vlgmr.msra.gmra.mrb[2].mxu1 %v2215_v6 }
 0x437   : > { %2028 = vmatpush3.bf16.msra.mxu1 %v2695_v33  ;;  %1794 = vmatprep.mubr.msk.f32.mxu1 %vm2422_vm1, %v2423_v35 }
 0x438   : > { %2029 = vmatprep.subr.bf16.mxu1 %v2421_v32 }
 0x43b   : > { %2031 = vmatpush3.bf16.msra.mxu1 %v2703_v36 }
 0x43c   : > { %2032 = vmatprep.subr.bf16.mxu1 %v2421_v32 }
 0x43f   : > { %2034 = vmatpush3.bf16.msra.mxu1 %v2709_v39 }
 0x440   : > { %2035 = vmatprep.subr.bf16.mxu1 %v2421_v32 }
 0x443   : > { %2037 = vmatpush3.bf16.msra.mxu1 %v2715_v42 }
 0x444   : > { %2038 = vmatprep.subr.bf16.mxu1 %v2421_v32 }
 0x447   : > { %2040 = vmatpush3.bf16.msra.mxu1 %v2721_v45 }
 0x448   : > { %2041 = vmatprep.subr.bf16.mxu1 %v2421_v32 }
 0x44b   : > { %2043 = vmatpush3.bf16.msra.mxu1 %v2727_v48 }
 0x44c   : > { %2044 = vmatprep.subr.bf16.mxu1 %v2421_v32 }
 0x44f   : > { %2046 = vmatpush3.bf16.msra.mxu1 %v2733_v51 }
 0x450   : > { %2047 = vmatprep.subr.bf16.mxu1 %v2421_v32 }
 0x453   : > { %2049 = vmatpush3.bf16.msra.mxu1 %v2739_v54 }
 0x454   : > { %2074 = vmatprep.subr.bf16.mxu1 %v2421_v32 }
 0x509   : > { %v810_v8 = vpop.f32.mrb[2].mxu1 }
 0x50a   : > { %v814_v9 = vadd.f32 %v1379_v7, %v810_v8  ;;  %v1726_v10 = vpop.f32.mrb[3].mxu1 }
 0x50c   : > { %2216 = vtanh.f32 %v814_v9 }
 0x516   : > { %v2217_v11 = vpop.eup %2216 }
 0x517   : > { %1760 = vmatmul.mubr.f32.vlgmr.msra.gmra.mrb[4].mxu0 %v2217_v11 }
 0x518   : > { %2052 = vmatpush3.bf16.msra.mxu0 %v2695_v33  ;;  %1829 = vmatprep.mubr.msk.f32.mxu0 %vm2422_vm1, %v2423_v35 }
 0x519   : > { %2053 = vmatprep.subr.bf16.mxu0 %v2421_v32 }
 0x51c   : > { %2055 = vmatpush3.bf16.msra.mxu0 %v2703_v36 }
 0x51d   : > { %2056 = vmatprep.subr.bf16.mxu0 %v2421_v32 }
 0x520   : > { %2058 = vmatpush3.bf16.msra.mxu0 %v2709_v39 }
 0x521   : > { %2059 = vmatprep.subr.bf16.mxu0 %v2421_v32 }
 0x524   : > { %2061 = vmatpush3.bf16.msra.mxu0 %v2715_v42 }
 0x525   : > { %2062 = vmatprep.subr.bf16.mxu0 %v2421_v32 }
 0x528   : > { %2064 = vmatpush3.bf16.msra.mxu0 %v2721_v45 }
 0x529   : > { %2065 = vmatprep.subr.bf16.mxu0 %v2421_v32 }
 0x52c   : > { %2067 = vmatpush3.bf16.msra.mxu0 %v2727_v48 }
 0x52d   : > { %2068 = vmatprep.subr.bf16.mxu0 %v2421_v32 }
 0x530   : > { %2070 = vmatpush3.bf16.msra.mxu0 %v2733_v51 }
 0x531   : > { %2071 = vmatprep.subr.bf16.mxu0 %v2421_v32 }
 0x534   : > { %2073 = vmatpush3.bf16.msra.mxu0 %v2739_v54 }
 0x5ea   : > { %v886_v13 = vpop.f32.mrb[4].mxu0 }
 0x5eb   : > { %v890_v14 = vadd.f32 %v1382_v12, %v886_v13  ;;  %v1761_v15 = vpop.f32.mrb[5].mxu0 }
 0x5ed   : > { %2218 = vtanh.f32 %v890_v14 }
 0x5f7   : > { %v2219_v16 = vpop.eup %2218 }
 0x5f8   : > { %1795 = vmatmul.mubr.f32.vlgmr.msra.gmra.mrb[4].mxu1 %v2219_v16 }
 0x5f9   : > { %2076 = vmatpush3.bf16.msra.mxu1 %v2695_v33  ;;  %1864 = vmatprep.mubr.msk.f32.mxu1 %vm2422_vm1, %v2423_v35 }
 0x5fa   : > { %2077 = vmatprep.subr.bf16.mxu1 %v2421_v32 }
 0x5fd   : > { %2079 = vmatpush3.bf16.msra.mxu1 %v2703_v36 }
 0x5fe   : > { %2080 = vmatprep.subr.bf16.mxu1 %v2421_v32 }
 0x601   : > { %2082 = vmatpush3.bf16.msra.mxu1 %v2709_v39 }
 0x602   : > { %2083 = vmatprep.subr.bf16.mxu1 %v2421_v32 }
 0x605   : > { %2085 = vmatpush3.bf16.msra.mxu1 %v2715_v42 }
 0x606   : > { %2086 = vmatprep.subr.bf16.mxu1 %v2421_v32 }
 0x609   : > { %2088 = vmatpush3.bf16.msra.mxu1 %v2721_v45 }
 0x60a   : > { %2089 = vmatprep.subr.bf16.mxu1 %v2421_v32 }
 0x60d   : > { %2091 = vmatpush3.bf16.msra.mxu1 %v2727_v48 }
 0x60e   : > { %2092 = vmatprep.subr.bf16.mxu1 %v2421_v32 }
 0x611   : > { %2094 = vmatpush3.bf16.msra.mxu1 %v2733_v51 }
 0x612   : > { %2095 = vmatprep.subr.bf16.mxu1 %v2421_v32 }
 0x615   : > { %2097 = vmatpush3.bf16.msra.mxu1 %v2739_v54 }
 0x6cb   : > { %v962_v18 = vpop.f32.mrb[4].mxu1 }
 0x6cc   : > { %v966_v19 = vadd.f32 %v1385_v17, %v962_v18  ;;  %v1796_v20 = vpop.f32.mrb[5].mxu1 }
 0x6ce   : > { %2220 = vtanh.f32 %v966_v19 }
 0x6d8   : > { %v2221_v21 = vpop.eup %2220 }
 0x6d9   : > { %1830 = vmatmul.mubr.f32.vlgmr.msra.gmra.mrb[6].mxu0 %v2221_v21 }
 0x7ac   : > { %v1038_v23 = vpop.f32.mrb[6].mxu0 }
 0x7ad   : > { %v1042_v24 = vadd.f32 %v1388_v22, %v1038_v23  ;;  %v1831_v25 = vpop.f32.mrb[7].mxu0 }
 0x7af   : > { %2222 = vtanh.f32 %v1042_v24 }
 0x7b9   : > { %v2223_v26 = vpop.eup %2222 }
 0x7ba   : > { %1865 = vmatmul.mubr.f32.vlgmr.msra.gmra.mrb[6].mxu1 %v2223_v26 }
 0x88d   : > { %v1114_v28 = vpop.f32.mrb[6].mxu1 }
 0x88e   : > { %v1118_v29 = vadd.f32 %v1391_v27, %v1114_v28  ;;  %v1866_v30 = vpop.f32.mrb[7].mxu1 }
 0x890   : > { %2224 = vtanh.f32 %v1118_v29 }
 0x89a   : > { %v2225_v31 = vpop.eup %2224 }
 0x89b   : > { %1120 = vst [vmem:[#allocation2] sm:$0xff] %v2225_v31 }
 0x89c PF: > { %p1392_p9 = scmp.ne.s32.totalorder %s2482_s25, 1 }
 0x89d   : > { %v1126_v32 = vld [vmem:[#allocation10] sm:$0xff] (!%p1392_p9)  ;;  %v1127_v33 = vld [vmem:[#allocation10 + $0x8] sm:$0xff] (!%p1392_p9)  ;;  %v1128_v34 = vld [vmem:[#allocation10 + $0x10] sm:$0xff] (!%p1392_p9)  ;;  %v2424_v35 = vmov (!%p1392_p9), 0.0|0.0   ;;  %vm2425_vm2 = vmmov (!%p1392_p9), 0   ;;  %v2426_v38 = vmov (!%p1392_p9), 0.0  }
 0x89e   : > { %1124 = sbr.rel (%p1392_p9) target bundleno = 2454 (0x996), region = 76  ;;  %2098 = vmatprep.subr.bf16.mxu0 (!%p1392_p9), %v2424_v35  ;;  %v2099_v36 = vpack.c.bf16 (!%p1392_p9), %v1127_v33, %v1126_v32  ;;  %v1129_v37 = vld [vmem:[#allocation10 + $0x18] sm:$0xff] (!%p1392_p9)  ;;  %1899 = vmatprep.mubr.msk.f32.mxu0 (!%p1392_p9), %vm2425_vm2, %v2426_v38  ;;  %v1130_v40 = vld [vmem:[#allocation10 + $0x20] sm:$0xff] (!%p1392_p9)  ;;  %v1131_v41 = vld [vmem:[#allocation10 + $0x28] sm:$0xff] (!%p1392_p9) }
 0x89f   : > { %v2102_v39 = vpack.c.bf16 (!%p1392_p9), %v1129_v37, %v1128_v34  ;;  %v2105_v42 = vpack.c.bf16 (!%p1392_p9), %v1131_v41, %v1130_v40  ;;  %v1132_v43 = vld [vmem:[#allocation10 + $0x30] sm:$0xff] (!%p1392_p9)  ;;  %v1133_v44 = vld [vmem:[#allocation10 + $0x38] sm:$0xff] (!%p1392_p9)  ;;  %v1134_v46 = vld [vmem:[#allocation10 + $0x40] sm:$0xff] (!%p1392_p9) }
 0x8a0   : > { %2100 = vmatpush3.bf16.msra.mxu0 (!%p1392_p9), %v2099_v36  ;;  %v2108_v45 = vpack.c.bf16 (!%p1392_p9), %v1133_v44, %v1132_v43  ;;  %v1135_v47 = vld [vmem:[#allocation10 + $0x48] sm:$0xff] (!%p1392_p9)  ;;  %v1136_v49 = vld [vmem:[#allocation10 + $0x50] sm:$0xff] (!%p1392_p9)  ;;  %v1137_v50 = vld [vmem:[#allocation10 + $0x58] sm:$0xff] (!%p1392_p9) }
 0x8a1   : > { %2101 = vmatprep.subr.bf16.mxu0 (!%p1392_p9), %v2424_v35  ;;  %v2111_v48 = vpack.c.bf16 (!%p1392_p9), %v1135_v47, %v1134_v46  ;;  %v2114_v51 = vpack.c.bf16 (!%p1392_p9), %v1137_v50, %v1136_v49  ;;  %v1138_v52 = vld [vmem:[#allocation10 + $0x60] sm:$0xff] (!%p1392_p9)  ;;  %v1139_v53 = vld [vmem:[#allocation10 + $0x68] sm:$0xff] (!%p1392_p9)  ;;  %v1140_v55 = vld [vmem:[#allocation10 + $0x70] sm:$0xff] (!%p1392_p9) }
 0x8a2   : > { %v2117_v54 = vpack.c.bf16 (!%p1392_p9), %v1139_v53, %v1138_v52  ;;  %v1141_v56 = vld [vmem:[#allocation10 + $0x78] sm:$0xff] (!%p1392_p9)  ;;  %v1125_v58 = vld [vmem:[#allocation2] sm:$0xff] (!%p1392_p9) }
 0x8a3   : > { %v2120_v57 = vpack.c.bf16 (!%p1392_p9), %v1141_v56, %v1140_v55  ;;  %v1393_v59 = vld [vmem:[%s2910_s5] ss:$0 sm:$0xff] (!%p1392_p9) }
 0x8a4   : > { %2103 = vmatpush3.bf16.msra.mxu0 (!%p1392_p9), %v2102_v39 }
 0x8a5   : > { %2104 = vmatprep.subr.bf16.mxu0 %v2424_v35 }
 0x8a8   : > { %2106 = vmatpush3.bf16.msra.mxu0 %v2105_v42 }
 0x8a9   : > { %2107 = vmatprep.subr.bf16.mxu0 %v2424_v35 }
 0x8ac   : > { %2109 = vmatpush3.bf16.msra.mxu0 %v2108_v45 }
 0x8ad   : > { %2110 = vmatprep.subr.bf16.mxu0 %v2424_v35 }
 0x8b0   : > { %2112 = vmatpush3.bf16.msra.mxu0 %v2111_v48 }
 0x8b1   : > { %2113 = vmatprep.subr.bf16.mxu0 %v2424_v35 }
 0x8b4   : > { %2115 = vmatpush3.bf16.msra.mxu0 %v2114_v51 }
 0x8b5   : > { %2116 = vmatprep.subr.bf16.mxu0 %v2424_v35 }
 0x8b8   : > { %2118 = vmatpush3.bf16.msra.mxu0 %v2117_v54 }
 0x8b9   : > { %2119 = vmatprep.subr.bf16.mxu0 %v2424_v35 }
 0x8bc   : > { %2121 = vmatpush3.bf16.msra.mxu0 %v2120_v57 }
 0x8bf   : > { %1900 = vmatmul.mubr.f32.vlgmr.msra.gmra.mrb[0].mxu0 %v1125_v58 }
 0x992   : > { %v1215_v60 = vpop.f32.mrb[0].mxu0 }
 0x993   : > { %v1216_v61 = vadd.f32 %v1393_v59, %v1215_v60  ;;  %v1901_v62 = vpop.f32.mrb[1].mxu0 }
 0x995   : > { %1219 = vst [vmem:[#allocation12] sm:$0xff] %v1216_v61 }
 0x996 PF: > { %p2163_p1 = scmp.eq.s32.totalorder %s2482_s25, 1  ;;  %s2427_s30 = smov [#allocation12]  }
 0x997   : > { %s1227_s29 = sshll.u32 %s2427_s30, 4  ;;  %s1228_s29 = int_to_ptr.vmem [resolvable:$true] %s1227_s29 }
 0x998   : > { %s2340_s26 = scalar_lea.vmem %s1228_s29, 128  ;;  %p2347_p5 = scmp.lt.s32.totalorder %s1228_s29, %s1228_s29 }
 0x999   : > { %p2341_p4 = scmp.ne.s32.totalorder %s1228_s29, %s2340_s26  ;;  %p2348_p8 = scmp.lt.s32.totalorder %s2340_s26, %s2340_s26 }
 0x99b   : > { %p2342_p7 = pnand %p2341_p4, %p2163_p1  ;;  %p2349_p6 = por %p2348_p8, %p2347_p5 }
 0x99d   : > { %p2343_p11 = pneg %p2342_p7 }
 0x99f   : > { %p2350_p10 = pnand %p2349_p6, %p2343_p11 }
 0x9a1   : > { %2353 = shalt.err (!%p2350_p10)
}
 0x9a2   : > { %s2354_s21 = scalar_lea.hbm %s2911_s6, 128 }
 0x9a3   : > { %p2355_p12 = scmp.ne.s32.totalorder %s2911_s6, %s2354_s21  ;;  %p2360_p2 = scmp.lt.u32.totalorder %s2354_s21, %s2911_s6 }
 0x9a5   : > { %p2356_p13 = pnand %p2355_p12, %p2163_p1 }
 0x9a7   : > { %p2357_p0 = pneg %p2356_p13 }
 0x9a9   : > { %p2362_p3 = pnand %p2360_p2, %p2357_p0 }
 0x9ab   : > { %2365 = shalt.err (!%p2362_p3)
}
 0x9ac   : > { %2139 = dma.vmem_to_hbm [thread:$0]  (%p2163_p1), %s1228_s29, 128, %s2911_s6, [#allocation6]  }
 0x9ad   : > { %2395 = dma.done.wait (%p2163_p1), [#allocation6], 128  }
 0x9ae   : > { %2397 = vsyncadd (%p2163_p1), [#allocation6], 4294967168 }
 0x9af PF: > { %p19_p9 = scmp.ge.s32.totalorder %s2594_s16, 4   ;;  %s2927_s21 = smov %s2404_s22 }
 0x9b0   : > { %s2928_s22 = smov %s2408_s23  ;;  %s2929_s23 = smov %s2607_s9 }
 0x9b1   : > { %s2930_s24 = smov %s2594_s16  ;;  %21 = sbr.rel (!%p19_p9) target bundleno = 6 (0x6), region = 118 }
 0x9b8   :  { %1240 = vsyncpa [#allocation5], 1 }
 0x9b9   :  { %1242 = vsyncpa [#allocation5 + $0x1], 1 }
 0x9ba   :  { %1243 = vsyncpa [#allocation8], 1 }
 0x9bb   :  { %1244 = vsyncpa [#allocation11], 1 }
 0x9bc   :  { %1245 = vsyncpa [#allocation6], 1 }
 0x9bd   :  { %1247 = vsyncpa [#allocation6 + $0x1], 1 }

</bundles_post_ra>
